<compile_context>
chip_gen: v7x
topology: tpu7x:2x2x1
jax: 0.10.0
libtpu: 0.0.40
codegen_flags: <defaults>
</compile_context>

<pallas_src>
import jax
import jax.numpy as jnp
from jax import lax
from jax.experimental import pallas as pl
from jax.experimental.pallas import tpu as pltpu


def _critic_kernel(x_ref, w1t_ref, p_ref, o_ref):
    """Fused Linear -> BatchNorm1d(train) -> Linear for one agent.

    x_ref  : (B, D)  untransposed input block
    w1t_ref: (H, D)  transposed Linear-1 weight
    p_ref  : (H, 4)  packed params: columns = [gamma, beta, w2, b2@row0]
    o_ref  : (1, B)  transposed output block
    """
    x = x_ref[...]                                     # (B, D) f32
    w1t = w1t_ref[...]                                 # (H, D) f32
    inv_b = 1.0 / x.shape[0]

    gamma = p_ref[:, 0:1]                              # (H, 1)
    beta = p_ref[:, 1:2]
    w2 = p_ref[:, 2:3]
    b2_col = p_ref[:, 3:4]                             # b2 at row 0, rest 0

    # ---- Linear 1 on the MXU, contracting the feature axis of both operands:
    #      h^T = w1^T . x^T  -> (H, B).  (b1 is cancelled by the BN mean.)
    h = lax.dot_general(w1t, x, (((1,), (1,)), ((), ())),
                        preferred_element_type=jnp.float32)        # (H, B)

    # ---- BatchNorm1d training stats over the batch (lane) axis, two-pass ----
    mean = jnp.sum(h, axis=-1, keepdims=True) * inv_b               # (H, 1)
    diff = h - mean                                                 # (H, B)
    var = jnp.sum(diff * diff, axis=-1, keepdims=True) * inv_b      # biased
    inv_std = lax.rsqrt(var + 1e-5)                                 # (H, 1)

    # ---- Fold BN affine + inv_std into Linear 2 ------------------------------
    #   out = gamma*(h-mean)*inv_std . w2 + beta.w2 + b2
    w2_scaled = w2 * gamma * inv_std                                # (H, 1)
    const = jnp.sum(beta * w2 + b2_col, keepdims=True)              # (1, 1)

    # N=1 "matmul" as VPU multiply + sublane reduction (MXU stays free).
    out = jnp.sum(diff * w2_scaled, axis=0, keepdims=True) + const  # (1, B)
    o_ref[...] = out.astype(o_ref.dtype)


def pack_critic_params(params_list):
    """One-time packing of A agents' params (hoisted out of the hot path).

    params_list: list of (w1 (D,H), b1 (1,H), gamma (1,H), beta (1,H),
                          w2 (H,1), b2 (1,1)) per agent.
    Returns (w1t (A,H,D), packed (A,H,4)).  b1 is intentionally dropped: the
    BatchNorm mean subtraction cancels it exactly.
    """
    w1t = jnp.stack([w1.T for (w1, _b1, _g, _be, _w2, _b2) in params_list])
    packed = []
    for (w1, _b1, gamma, beta, w2, b2) in params_list:
        hidden = w1.shape[1]
        b2_col = jnp.pad(b2.reshape(1, 1), ((0, hidden - 1), (0, 0)))  # (H, 1)
        packed.append(jnp.concatenate([gamma.T, beta.T, w2, b2_col], axis=1))
    return w1t, jnp.stack(packed)                       # (A,H,D), (A,H,4)


def critic_forward(x, w1t, packed):
    """Batched MADDPG critics.  x: (A, B, D) f32 -> (A, B, 1) f32."""
    A, B, D = x.shape
    H = w1t.shape[1]

    flops = 2 * A * B * D * H + 6 * A * B * H
    bytes_accessed = 4 * A * (B * D + H * D + H * 4 + B)

    out_t = pl.pallas_call(
        _critic_kernel,
        out_shape=jax.ShapeDtypeStruct((A, 1, B), jnp.float32),
        grid=(A,),
        in_specs=[
            pl.BlockSpec((None, B, D), lambda a: (a, 0, 0)),   # x
            pl.BlockSpec((None, H, D), lambda a: (a, 0, 0)),   # w1t
            pl.BlockSpec((None, H, 4), lambda a: (a, 0, 0)),   # packed params
        ],
        out_specs=pl.BlockSpec((None, 1, B), lambda a: (a, 0, 0)),
        compiler_params=pltpu.CompilerParams(
            dimension_semantics=("parallel",)),                # v7x: 2 TCs
        cost_estimate=pl.CostEstimate(
            flops=flops, transcendentals=0, bytes_accessed=bytes_accessed),
    )(x, w1t, packed)
    # (A, 1, B) -> (A, B, 1): pure reshape, same element order.
    return out_t.reshape(A, B, 1)


critic_forward = jax.jit(critic_forward)


def init_critic_params(in_dims, key):
    """Deterministic parameter init mimicking PyTorch defaults (shapes only)."""
    hidden = in_dims // 2
    k1, k2, k3, k4 = jax.random.split(key, 4)
    lim1 = 1.0 / jnp.sqrt(in_dims)
    w1 = jax.random.uniform(k1, (in_dims, hidden), jnp.float32, -lim1, lim1)
    b1 = jax.random.uniform(k2, (1, hidden), jnp.float32, -lim1, lim1)
    gamma = jnp.ones((1, hidden), jnp.float32)
    beta = jnp.zeros((1, hidden), jnp.float32)
    lim2 = 1.0 / jnp.sqrt(hidden)
    w2 = jax.random.uniform(k3, (hidden, 1), jnp.float32, -lim2, lim2)
    b2 = jax.random.uniform(k4, (1, 1), jnp.float32, -lim2, lim2)
    return (w1, b1, gamma, beta, w2, b2)


def critic_reference(x, params):
    """Pure-JAX reference for ONE agent (matches PyTorch training-mode fwd)."""
    w1, b1, gamma, beta, w2, b2 = params
    h = x @ w1 + b1
    mean = h.mean(axis=0, keepdims=True)
    var = ((h - mean) ** 2).mean(axis=0, keepdims=True)
    h_bn = gamma * (h - mean) * lax.rsqrt(var + 1e-5) + beta
    return h_bn @ w2 + b2


if __name__ == "__main__":
    # in_dims = 6 + n_agents ; pick n_agents = 10 -> in_dims = 16, hidden = 8.
    # A = 4 per-agent critics batched into one pallas_call, batch B = 8.
    A, B, in_dims = 4, 8, 16
    key = jax.random.PRNGKey(0)
    kx, kp = jax.random.split(key)

    x = jax.random.normal(kx, (A, B, in_dims), dtype=jnp.float32)
    params_list = [init_critic_params(in_dims, k)
                   for k in jax.random.split(kp, A)]

    # One-time packing (outside the per-forward hot path).
    w1t, packed = pack_critic_params(params_list)

    out = critic_forward(x, w1t, packed)
    out = jax.block_until_ready(out)
    assert out.shape == (A, B, 1)

    ref = jnp.stack([critic_reference(x[a], params_list[a]) for a in range(A)])
    assert jnp.allclose(out, ref, atol=1e-4, rtol=1e-4), (out, ref)
    print("KERNEL_OK")
</pallas_src>

<mosaic_0001>
module attributes {stable_mosaic.version = 11 : i64} {
  func.func @_critic_kernel(%arg0: i32, %arg1: memref<1x8x16xf32, #tpu.memory_space<vmem>>, %arg2: memref<1x8x16xf32, #tpu.memory_space<vmem>>, %arg3: memref<1x8x4xf32, #tpu.memory_space<vmem>>, %arg4: memref<1x1x8xf32, #tpu.memory_space<vmem>>) attributes {dimension_semantics = [#tpu.dimension_semantics<parallel>], iteration_bounds = array<i64: 4>, scalar_prefetch = 0 : i64, scratch_operands = 0 : i64, tpu.core_type = #tpu.core_type<tc>, window_params = [{transform_indices = @transform_0, window_bounds = array<i64: 1, 8, 16>}, {transform_indices = @transform_1, window_bounds = array<i64: 1, 8, 16>}, {transform_indices = @transform_2, window_bounds = array<i64: 1, 8, 4>}, {transform_indices = @transform_3, window_bounds = array<i64: 1, 1, 8>}]} {
    %c0 = arith.constant 0 : index
    %c0_0 = arith.constant 0 : index
    %c0_1 = arith.constant 0 : index
    %0 = vector.load %arg1[%c0, %c0_0, %c0_1] : memref<1x8x16xf32, #tpu.memory_space<vmem>>, vector<1x8x16xf32>
    %1 = vector.shape_cast %0 : vector<1x8x16xf32> to vector<8x16xf32>
    %c0_2 = arith.constant 0 : index
    %c0_3 = arith.constant 0 : index
    %c0_4 = arith.constant 0 : index
    %2 = vector.load %arg2[%c0_2, %c0_3, %c0_4] : memref<1x8x16xf32, #tpu.memory_space<vmem>>, vector<1x8x16xf32>
    %3 = vector.shape_cast %2 : vector<1x8x16xf32> to vector<8x16xf32>
    %c0_5 = arith.constant 0 : index
    %c0_6 = arith.constant 0 : index
    %c0_7 = arith.constant 0 : index
    %4 = vector.load %arg3[%c0_5, %c0_6, %c0_7] : memref<1x8x4xf32, #tpu.memory_space<vmem>>, vector<1x8x1xf32>
    %5 = vector.shape_cast %4 : vector<1x8x1xf32> to vector<8x1xf32>
    %c0_8 = arith.constant 0 : index
    %c0_9 = arith.constant 0 : index
    %c1 = arith.constant 1 : index
    %6 = vector.load %arg3[%c0_8, %c0_9, %c1] : memref<1x8x4xf32, #tpu.memory_space<vmem>>, vector<1x8x1xf32>
    %7 = vector.shape_cast %6 : vector<1x8x1xf32> to vector<8x1xf32>
    %c0_10 = arith.constant 0 : index
    %c0_11 = arith.constant 0 : index
    %c2 = arith.constant 2 : index
    %8 = vector.load %arg3[%c0_10, %c0_11, %c2] : memref<1x8x4xf32, #tpu.memory_space<vmem>>, vector<1x8x1xf32>
    %9 = vector.shape_cast %8 : vector<1x8x1xf32> to vector<8x1xf32>
    %c0_12 = arith.constant 0 : index
    %c0_13 = arith.constant 0 : index
    %c3 = arith.constant 3 : index
    %10 = vector.load %arg3[%c0_12, %c0_13, %c3] : memref<1x8x4xf32, #tpu.memory_space<vmem>>, vector<1x8x1xf32>
    %11 = vector.shape_cast %10 : vector<1x8x1xf32> to vector<8x1xf32>
    %cst = arith.constant dense<0.000000e+00> : vector<8x8xf32>
    %12 = tpu.matmul %3, %1, %cst {dimension_numbers = #tpu.dot_dimension_numbers<[1], [1], [0], [0], [0, 0, 1, 0], [], []>} : vector<8x16xf32>, vector<8x16xf32>, vector<8x8xf32> -> vector<8x8xf32>
    %cst_14 = arith.constant dense<0.000000e+00> : vector<8xf32>
    %13 = vector.multi_reduction <add>, %12, %cst_14 [1] : vector<8x8xf32> to vector<8xf32>
    %14 = vector.shape_cast %13 : vector<8xf32> to vector<8x1xf32>
    %cst_15 = arith.constant 1.250000e-01 : f32
    %15 = vector.broadcast %cst_15 : f32 to vector<8x1xf32>
    %16 = arith.mulf %14, %15 : vector<8x1xf32>
    %17 = vector.broadcast %16 : vector<8x1xf32> to vector<8x8xf32>
    %18 = arith.subf %12, %17 : vector<8x8xf32>
    %19 = arith.mulf %18, %18 : vector<8x8xf32>
    %cst_16 = arith.constant dense<0.000000e+00> : vector<8xf32>
    %20 = vector.multi_reduction <add>, %19, %cst_16 [1] : vector<8x8xf32> to vector<8xf32>
    %21 = vector.shape_cast %20 : vector<8xf32> to vector<8x1xf32>
    %cst_17 = arith.constant 1.250000e-01 : f32
    %22 = vector.broadcast %cst_17 : f32 to vector<8x1xf32>
    %23 = arith.mulf %21, %22 : vector<8x1xf32>
    %cst_18 = arith.constant 9.99999974E-6 : f32
    %24 = vector.broadcast %cst_18 : f32 to vector<8x1xf32>
    %25 = arith.addf %23, %24 : vector<8x1xf32>
    %26 = math.rsqrt %25 : vector<8x1xf32>
    %27 = arith.mulf %9, %5 : vector<8x1xf32>
    %28 = arith.mulf %27, %26 : vector<8x1xf32>
    %29 = arith.mulf %7, %9 : vector<8x1xf32>
    %30 = arith.addf %29, %11 : vector<8x1xf32>
    %31 = vector.shape_cast %30 : vector<8x1xf32> to vector<1x8x1xf32>
    %cst_19 = arith.constant dense<0.000000e+00> : vector<1xf32>
    %32 = vector.multi_reduction <add>, %31, %cst_19 [1, 2] : vector<1x8x1xf32> to vector<1xf32>
    %33 = vector.shape_cast %32 : vector<1xf32> to vector<1x1x1xf32>
    %34 = vector.extract %33[0, 0, 0] : f32 from vector<1x1x1xf32>
    %35 = vector.broadcast %34 : f32 to vector<1x1xf32>
    %36 = vector.broadcast %28 : vector<8x1xf32> to vector<8x8xf32>
    %37 = arith.mulf %18, %36 : vector<8x8xf32>
    %cst_20 = arith.constant dense<0.000000e+00> : vector<8xf32>
    %38 = vector.multi_reduction <add>, %37, %cst_20 [0] : vector<8x8xf32> to vector<8xf32>
    %39 = vector.shape_cast %38 : vector<8xf32> to vector<1x8xf32>
    %40 = vector.broadcast %35 : vector<1x1xf32> to vector<1x8xf32>
    %41 = arith.addf %39, %40 : vector<1x8xf32>
    %c0_21 = arith.constant 0 : index
    %c0_22 = arith.constant 0 : index
    %c0_23 = arith.constant 0 : index
    %42 = vector.load %arg4[%c0_21, %c0_22, %c0_23] : memref<1x1x8xf32, #tpu.memory_space<vmem>>, vector<1x1x8xf32>
    %43 = vector.shape_cast %42 : vector<1x1x8xf32> to vector<1x8xf32>
    %44 = vector.shape_cast %41 : vector<1x8xf32> to vector<1x1x8xf32>
    tpu.vector_store %arg4[%c0_21, %c0_22, %c0_23], %44 {strides = array<i32>} : memref<1x1x8xf32, #tpu.memory_space<vmem>>, vector<1x1x8xf32>,
    return
  }
  func.func @transform_0(%arg0: i32) -> (i32, i32, i32) {
    %c0_i32 = arith.constant 0 : i32
    %c0_i32_0 = arith.constant 0 : i32
    %c0_i32_1 = arith.constant 0 : i32
    return %arg0, %c0_i32, %c0_i32_0 : i32, i32, i32
  }
  func.func @transform_1(%arg0: i32) -> (i32, i32, i32) {
    %c0_i32 = arith.constant 0 : i32
    %c0_i32_0 = arith.constant 0 : i32
    %c0_i32_1 = arith.constant 0 : i32
    return %arg0, %c0_i32, %c0_i32_0 : i32, i32, i32
  }
  func.func @transform_2(%arg0: i32) -> (i32, i32, i32) {
    %c0_i32 = arith.constant 0 : i32
    %c0_i32_0 = arith.constant 0 : i32
    %c0_i32_1 = arith.constant 0 : i32
    return %arg0, %c0_i32, %c0_i32_0 : i32, i32, i32
  }
  func.func @transform_3(%arg0: i32) -> (i32, i32, i32) {
    %c0_i32 = arith.constant 0 : i32
    %c0_i32_0 = arith.constant 0 : i32
    %c0_i32_1 = arith.constant 0 : i32
    return %arg0, %c0_i32, %c0_i32_0 : i32, i32, i32
  }
}

</mosaic_0001>

<bundles_post_ra>
// kernel: critic_forward.1
= control target key start
LH: loop header
LB: loop body
LE: loop exit
PB: predicated region body
PF: predicated region fallthrough
CT: control target
= control target key end

     0   :  { %8 = vsyncpa [#allocation3], 0  ;;  %s836_s0 = inlined_call_operand.vmem [shape: f32[4,8,16], index: 0, kind: input, shape index: {}]   ;;  %s837_s1 = inlined_call_operand.hbm [shape: f32[4,8,16], index: 1, kind: input, shape index: {}]   ;;  %s838_s2 = inlined_call_operand.vmem [shape: f32[4,8,4], index: 2, kind: input, shape index: {}]   ;;  %s839_s3 = inlined_call_operand.hbm [shape: f32[4,1,8], index: 3, kind: output, shape index: {}]  }
   0x1   :  { %10 = vsyncpa [#allocation3 + $0x1], 0 }
   0x2   :  { %11 = vsyncpa [#allocation4], 0 }
   0x3   :  { %13 = vsyncpa [#allocation4 + $0x1], 0  ;;  %s665_s12 = smov 0   ;;  %s667_s13 = smov 0  }
   0x4   :  { %s669_s14 = smov 0   ;;  %s671_s15 = smov 0  }
   0x5 LB: > { %s686_s16 = sadd.s32 4294967295, %s635_s15   ;;  %s461_s17 = sadd.s32 4294967294, %s635_s15   ;;  %s635_s15 = sphi %s671_s15, %s853_s15   ;;  %s631_s14 = sphi %s669_s14, %s852_s14   ;;  %s627_s13 = sphi %s667_s13, %s851_s13   ;;  %s623_s12 = sphi %s665_s12, %s850_s12  }
   0x6   : > { %s690_s18 = sadd.s32 1, %s635_s15   ;;  %s52_s19 = sadd.s32 1, %s631_s14 }
   0x7   : > { %s49_s20 = ssub.s32 %s635_s15, %s690_s18  ;;  %p59_p0 = scmp.ne.s32.totalorder %s631_s14, %s627_s13 }
   0x8   : > { %p50_p1 = scmp.eq.s32.totalorder %s49_s20, 0  ;;  %p60_p2 = scmp.eq.s32.totalorder %s635_s15, 0 }
   0x9   : > { %p65_p3 = scmp.ne.s32.totalorder %s627_s13, %s623_s12  ;;  %p66_p4 = scmp.eq.s32.totalorder %s686_s16, 0 }
   0xa   : > { %s702_s21 = scalar_select %p50_p1, %s631_s14, %s52_s19  }
   0xb   : > { %p704_p5 = por %p60_p2, %p59_p0  ;;  %p708_p6 = por %p66_p4, %p65_p3 }
   0xc   : > { %p115_p7 = scmp.eq.s32.totalorder %s686_s16, 3  ;;  %p121_p8 = scmp.eq.s32.totalorder %s461_s17, 3 }
   0xd   : > { %p496_p9 = scmp.lt.s32.totalorder %s635_s15, 4  ;;  %s148_s26 = sand.u32 1, %s631_s14  }
   0xe   : > { %p714_p10 = por %p115_p7, %p59_p0  ;;  %p718_p11 = por %p121_p8, %p65_p3 }
   0xf   : > { %s465_s27 = sshll.u32 %s635_s15, 7  ;;  %s464_s28 = sshll.u32 %s148_s26, 3 }
  0x10   : > { %s843_s24 = scalar_select %p714_p10, 1, 0 }
  0x11   : > { %s844_s25 = scalar_select %p718_p11, 1, 0 }
  0x12   : > { %s727_s4 = scalar_lea.hbm %s837_s1, %s465_s27  ;;  %s152_s5 = scalar_lea.vmem [#allocation2], %s464_s28 }
  0x13   : > { %s159_s6 = sshll.u32 %s152_s5, 4  ;;  %p731_p12 = pnand %p496_p9, %p704_p5  ;;  %s735_s6 = int_to_ptr.vmem [resolvable:$true] %s159_s6 }
  0x14   : > { %s149_s8 = scalar_lea.sflag [#allocation3], %s148_s26  ;;  %s539_s9 = scalar_lea.hbm %s727_s4, 128 }
  0x15   : > { %p540_p1 = scmp.ne.s32.totalorder %s727_s4, %s539_s9  ;;  %p541_p2 = pneg %p731_p12 }
  0x16   : > { %s544_s17 = scalar_lea.hbm %s837_s1, 512  ;;  %p545_p5 = scmp.lt.u32.totalorder %s727_s4, %s837_s1 }
  0x17   : > { %p542_p3 = pnand %p541_p2, %p540_p1  ;;  %p546_p7 = scmp.lt.u32.totalorder %s544_s17, %s539_s9 }
  0x18   : > { %p548_p9 = scmp.lt.u32.totalorder %s539_s9, %s727_s4 }
  0x19   : > { %p543_p4 = pneg %p542_p3  ;;  %p547_p8 = por %p546_p7, %p545_p5 }
  0x1b   : > { %p549_p13 = por %p548_p9, %p547_p8 }
  0x1d   : > { %p550_p0 = pnand %p549_p13, %p543_p4 }
  0x1f   : > { %553 = shalt.err (!%p550_p0)
}
  0x20   : > { %s554_s22 = scalar_lea.vmem %s735_s6, 128  ;;  %s637_s26 = smov [#allocation2]  }
  0x21   : > { %p555_p1 = scmp.ne.s32.totalorder %s735_s6, %s554_s22  ;;  %s559_s27 = sshll.u32 %s637_s26, 4  ;;  %s560_s27 = int_to_ptr.vmem [resolvable:$false] %s559_s27 }
  0x22   : > { %s561_s28 = scalar_lea.vmem %s560_s27, 256  ;;  %p562_p10 = scmp.lt.s32.totalorder %s735_s6, %s560_s27 }
  0x23   : > { %p557_p3 = pnand %p555_p1, %p541_p2  ;;  %p563_p5 = scmp.lt.s32.totalorder %s561_s28, %s554_s22 }
  0x25   : > { %p558_p11 = pneg %p557_p3  ;;  %p564_p7 = por %p563_p5, %p562_p10 }
  0x27   : > { %p565_p8 = pnand %p564_p7, %p558_p11 }
  0x29   : > { %568 = shalt.err (!%p565_p8)
}
  0x2a   : > { %491 = dma.hbm_to_vmem [thread:$0]  (!%p731_p12), %s727_s4, 128, %s735_s6, %s149_s8  }
  0x2b   : > { %p846_p13 = scmp.lt.s32.totalorder %s635_s15, 5  ;;  %p847_p0 = scmp.ge.s32.totalorder %s635_s15, 1 }
  0x2d   : > { %p172_p2 = pnand %p847_p0, %p846_p13 }
  0x2e   : > { %s769_s29 = sand.u32 (!%p172_p2), 1, %s627_s13  }
  0x2f   : > { %175 = sbr.rel (%p172_p2) target bundleno = 745 (0x2e9), region = 32  ;;  %s467_s30 = sshll.u32 (!%p172_p2), %s769_s29, 3 }
  0x30   : > { %s178_s5 = scalar_lea.sflag (!%p172_p2), [#allocation3], %s769_s29  ;;  %s181_s9 = scalar_lea.vmem (!%p172_p2), [#allocation2], %s467_s30 }
  0x36   : > { %614 = dma.done.wait (%p708_p6), %s178_s5, 128  }
  0x37   : > { %616 = vsyncadd (%p708_p6), %s178_s5, 4294967168  ;;  %p211_p10 = scmp.lt.s32.totalorder %s686_s16, 3  ;;  %v638_v0 = vmov 0.0   ;;  %vm639_vm0 = vmmov 0   ;;  %vm222_vm1 = vcmask 130048   ;;  %v220_v2 = vld [vmem:[%s181_s9] sm:$0xff] }
  0x38   : > { %477 = vmatprep.subr.mxu0 %v638_v0  ;;  %479 = vmatprep.mubr.msk.f32.mxu0 %vm639_vm0, %v638_v0  ;;  %s640_s19 = smov 127   ;;  %s641_s20 = smov 126   ;;  %vm299_vm2 = vcmask 64512   ;;  %vm330_vm3 = vcmask 7168   ;;  %v643_v18 = vmov 2   ;;  %vm356_vm4 = vcmask 57344  }
  0x39   : > { %s212_s4 = scalar_select %p211_p10, %s686_s16, 3  ;;  %536 = vset.pattern.permute.xlu0 %v643_v18 }
  0x3a   : > { %s642_s22 = smov 2   ;;  %s472_s27 = sshll.u32 %s686_s16, 4 }
  0x3b   : > { %s468_s6 = sshll.u32 %s212_s4, 3  ;;  %s210_s28 = scalar_lea.vmem [#allocation5], %s769_s29 }
  0x3c   : > { %s214_s10 = scalar_lea.vmem %s836_s0, %s468_s6  ;;  %s218_s17 = scalar_lea.vmem %s838_s2, %s468_s6 }
  0x3d   : > { %v219_v1 = vld [vmem:[%s214_s10] sm:$0xff]  ;;  %s371_s30 = sshll.u32 %s210_s28, 4  ;;  %s793_s4 = scalar_lea.hbm %s839_s3, %s472_s27  ;;  %s795_s30 = int_to_ptr.vmem [resolvable:$true] %s371_s30 }
  0x3e   : > { %478 = vmatpush3.xpose.msk.msra.mxu0 %vm222_vm1, %v219_v1  ;;  %v221_v3 = vld [vmem:[%s218_s17] sm:$0xff]  ;;  %s359_s6 = scalar_lea.sflag [#allocation4], %s769_s29  ;;  %s569_s7 = scalar_lea.vmem %s795_s30, 16 }
  0x3f   : > { %318 = vrot.lane.b32.xlu0 %v221_v3, %s640_s19  ;;  %p570_p6 = scmp.ne.s32.totalorder %s795_s30, %s569_s7  ;;  %p848_p11 = scmp.ne.s32.totalorder %s843_s24, 0 }
  0x40   : > { %s644_s16 = smov [#allocation5]  }
  0x41   : > { %480 = vmatmul.mubr.msk.f32.vlgmr.msra.gmra.mrb[0].mxu0 %vm222_vm1, %v220_v2  ;;  %p571_p12 = pnand %p570_p6, %p848_p11  ;;  %s573_s8 = sshll.u32 %s644_s16, 4  ;;  %s574_s8 = int_to_ptr.vmem [resolvable:$false] %s573_s8 }
  0x42   : > { %s575_s10 = scalar_lea.vmem %s574_s8, 32  ;;  %p576_p9 = scmp.lt.s32.totalorder %s795_s30, %s574_s8 }
  0x43   : > { %322 = vrot.lane.b32.xlu0 %v221_v3, %s641_s20  ;;  %p572_p4 = pneg %p571_p12  ;;  %p577_p1 = scmp.lt.s32.totalorder %s575_s10, %s569_s7 }
  0x45   : > { %p578_p3 = por %p577_p1, %p576_p9 }
  0x47   : > { %p579_p5 = pnand %p578_p3, %p572_p4 }
  0xb1   : > { %v319_v7 = vpop.permute.xlu0 %318 }
  0xb2   : > { %v321_v8 = vmul.f32 %v319_v7, %v221_v3 }
  0xb5   : > { %v323_v9 = vpop.permute.xlu0 %322 }
  0xb6   : > { %v325_v10 = vadd.f32 %v323_v9, %v321_v8 }
 0x114   : > { %v295_v4 = vpop.f32.mrb[0].mxu0 }
 0x115   : > { %v481_v5 = vpop.f32.mrb[1].mxu0  ;;  %v300_v6 = vsel %vm299_vm2, %v295_v4, 0.0 }
 0x116   : > { %301 = vadd.xlane.f32.xlu1 %v300_v6 }
 0x127   : > { %327 = vrot.lane.b32.xlu1 %v325_v10, %s640_s19 }
 0x12b   : > { %313 = vrot.lane.b32.xlu1 %v221_v3, %s642_s22 }
 0x1a3   : > { %v302_v11 = vpop.xlane.xlu1 %301 }
 0x1a4   : > { %v303_v12 = vmul.f32 0.125, %v302_v11 }
 0x1a6   : > { %v304_v13 = vsub.f32 %v295_v4, %v303_v12 }
 0x1a7   : > { %v328_v14 = vpop.permute.xlu1 %327 }
 0x1a8   : > { %v305_v15 = vmul.f32 %v304_v13, %v304_v13  ;;  %v331_v16 = vsel %vm330_vm3, %v328_v14, 0.0 }
 0x1a9   : > { %332 = vadd.xlane.f32.xlu1 %v331_v16 }
 0x1aa   : > { %v306_v17 = vsel %vm299_vm2, %v305_v15, 0.0 }
 0x1ab   : > { %307 = vadd.xlane.f32.xlu0 %v306_v17  ;;  %v314_v19 = vpop.permute.xlu1 %313 }
 0x1ac   : > { %v316_v30 = vmul.f32 %v314_v19, %v221_v3 }
 0x236   : > { %v333_v20 = vpop.xlane.xlu1 %332 }
 0x237   : > { %v334_v21 = vrot.slane %v333_v20, 4 }
 0x238   : > { %v308_v22 = vpop.xlane.xlu0 %307 }
 0x239   : > { %v309_v23 = vmul.f32 0.125, %v308_v22  ;;  %v335_v24 = vadd.f32 %v334_v21, %v333_v20 }
 0x23b   : > { %v310_v25 = vadd.f32 1e-05, %v309_v23  ;;  %v336_v26 = vrot.slane %v335_v24, 2 }
 0x23d   : > { %537 = vrsqrt.f32 %v310_v25  ;;  %v337_v27 = vadd.f32 %v336_v26, %v335_v24 }
 0x23f   : > { %v338_v28 = vrot.slane %v337_v27, 1 }
 0x241   : > { %v339_v29 = vadd.f32 %v338_v28, %v337_v27 }
 0x243   : > { %482 = vpush %v339_v29 }
 0x247   : > { %v538_v31 = vpop.eup %537 }
 0x248   : > { %v317_v32 = vmul.f32 %v538_v31, %v316_v30 }
 0x24a   : > { %343 = vperm.xlu0 %536, %v317_v32  }
 0x274   : > { %s483_s26 = spop %482 }
 0x275   : > { %v354_v42 = vstv %s483_s26 }
 0x2c9   : > { %v344_v33 = vpop.permute.xlu0 %343 }
 0x2ca   : > { %v346_v34 = vmul.f32 %v344_v33, %v304_v13 }
 0x2cc   : > { %v347_v35 = vsel %vm299_vm2, %v346_v34, 0.0 }
 0x2cd   : > { %v348_v36 = vrot.slane %v347_v35, 4 }
 0x2cf   : > { %v349_v37 = vadd.f32 %v348_v36, %v347_v35 }
 0x2d1   : > { %v350_v38 = vrot.slane %v349_v37, 2 }
 0x2d3   : > { %v351_v39 = vadd.f32 %v350_v38, %v349_v37 }
 0x2d5   : > { %v352_v40 = vrot.slane %v351_v39, 1 }
 0x2d7   : > { %v353_v41 = vadd.f32 %v352_v40, %v351_v39 }
 0x2d9   : > { %v355_v43 = vadd.f32 %v354_v42, %v353_v41 }
 0x2db   : > { %357 = vst.msk [vmem:[%s210_s28] sm:$0x1] %vm356_vm4, %v355_v43 }
 0x2dc   : > { %582 = shalt.err (!%p579_p5)
}
 0x2dd   : > { %s583_s29 = scalar_lea.hbm %s793_s4, 16  ;;  %s587_s17 = scalar_lea.hbm %s839_s3, 64 }
 0x2de   : > { %p584_p7 = scmp.ne.s32.totalorder %s793_s4, %s583_s29  ;;  %p588_p0 = scmp.lt.u32.totalorder %s793_s4, %s839_s3 }
 0x2df   : > { %p589_p2 = scmp.lt.u32.totalorder %s587_s17, %s583_s29  ;;  %p591_p6 = scmp.lt.u32.totalorder %s583_s29, %s793_s4 }
 0x2e0   : > { %p585_p8 = pnand %p584_p7, %p848_p11 }
 0x2e1   : > { %p590_p10 = por %p589_p2, %p588_p0 }
 0x2e2   : > { %p586_p13 = pneg %p585_p8 }
 0x2e3   : > { %p592_p12 = por %p591_p6, %p590_p10 }
 0x2e5   : > { %p593_p4 = pnand %p592_p12, %p586_p13 }
 0x2e7   : > { %596 = shalt.err (!%p593_p4)
}
 0x2e8   : > { %486 = dma.vmem_to_hbm [thread:$0]  (%p848_p11), %s795_s30, 16, %s793_s4, %s359_s6  }
 0x2e9 PF: > { %p497_p9 = scmp.ge.s32.totalorder %s635_s15, 2  ;;  %s383_s22 = sand.u32 1, %s623_s12  }
 0x2ea   : > { %p849_p1 = scmp.ne.s32.totalorder %s844_s25, 0  ;;  %s384_s26 = scalar_lea.sflag [#allocation4], %s383_s22 }
 0x2ec   : > { %p493_p3 = pnand %p497_p9, %p849_p1 }
 0x2ee   : > { %618 = dma.done.wait (!%p493_p3), %s384_s26, 16  }
 0x2ef   : > { %620 = vsyncadd (!%p493_p3), %s384_s26, 4294967280  ;;  %p16_p5 = scmp.ge.s32.totalorder %s690_s18, 6   ;;  %s850_s12 = smov %s627_s13 }
 0x2f0   : > { %s851_s13 = smov %s631_s14  ;;  %s852_s14 = smov %s702_s21 }
 0x2f1   : > { %s853_s15 = smov %s690_s18  ;;  %18 = sbr.rel (!%p16_p5) target bundleno = 5 (0x5), region = 83 }
 0x2f8   :  { %388 = vsyncpa [#allocation3], 1 }
 0x2f9   :  { %390 = vsyncpa [#allocation3 + $0x1], 1 }
 0x2fa   :  { %391 = vsyncpa [#allocation4], 1 }
 0x2fb   :  { %393 = vsyncpa [#allocation4 + $0x1], 1 }

</bundles_post_ra>
